<compile_context>
chip_gen: v5e
topology: v5e:2x2
jax: 0.10.0
libtpu: 0.0.40
codegen_flags: <defaults>
</compile_context>

<pallas_src>
import functools

import jax
import jax.numpy as jnp
import numpy as np
from jax.experimental import pallas as pl
from jax.experimental.pallas import tpu as pltpu


# ----------------------------- fused Pallas kernel -------------------------- #

def miner_fused_kernel(hist_ref, cand_ref, mb_ref, wp_ref, codest_ref, wta_ref,
                       poly_ref, score_ref, *, k_actual):
    """PolyAttention (+category bias) fused with weighted matching scores.

    One grid step handles a tile of Bt batch elements; the poly representation
    stays in VMEM between the two stages.  All matmul operands are bf16 with
    f32 accumulation; softmax / gelu math is f32.
    """
    Bt, Hp, Dp = hist_ref.shape
    Np = cand_ref.shape[1]
    Kp = codest_ref.shape[1]

    hist = hist_ref[...]            # (Bt, Hp, Dp) bf16  history news repr (zero-padded)
    cand = cand_ref[...]            # (Bt, Np, Dp) bf16  candidate news repr
    mb = mb_ref[...]                # (Bt, Hp, 2)  f32   [mask, add-constant]
    wp = wp_ref[...]                # (Dp, Cp)     bf16  poly linear weight (transposed)
    codes_t = codest_ref[...]       # (Cp, Kp)     bf16  context codes (transposed)
    wta = wta_ref[...]              # (Dp, Dp)     bf16  target-aware linear weight (T)

    # ---- PolyAttention with category-aware bias ----
    # proj = tanh(embeddings @ W^T): batch folded into MXU rows        (Bt*Hp, Cp)
    proj = jnp.tanh(jnp.dot(hist.reshape(Bt * Hp, Dp), wp,
                            preferred_element_type=jnp.float32))
    # logits = proj @ codes^T                                          (Bt, Hp, Kp)
    logits = jnp.dot(proj.astype(jnp.bfloat16), codes_t,
                     preferred_element_type=jnp.float32).reshape(Bt, Hp, Kp)

    # masked_fill + bias as one FMA:
    #   valid row:          1*logits + bias
    #   model-padded row:   0*logits + 1e-30    (reference quirk preserved)
    #   synthetic-pad row:  0*logits + (-1e30)  (excluded from the softmax)
    m = mb[:, :, 0:1]               # (Bt, Hp, 1)
    addc = mb[:, :, 1:2]            # (Bt, Hp, 1)
    w = logits * m + addc

    # softmax over the history axis (per batch element, per context code)
    w = w - jnp.max(w, axis=1, keepdims=True)
    e = jnp.exp(w)
    probs = e * pl.reciprocal(jnp.sum(e, axis=1, keepdims=True), approx=True)

    # poly_repr = softmax @ embeddings (no explicit transpose)        (Bt, Kp, Dp)
    poly = jnp.einsum('bhk,bhd->bkd', probs.astype(jnp.bfloat16), hist,
                      preferred_element_type=jnp.float32)
    poly_ref[...] = poly

    # ---- matching scores + TargetAwareAttention ('weighted') ----
    # q = gelu(poly @ W^T)   (exact erf-based gelu, torch default)
    q = jnp.dot(poly.reshape(Bt * Kp, Dp).astype(jnp.bfloat16), wta,
                preferred_element_type=jnp.float32)                   # (Bt*Kp, Dp)
    q = 0.5 * q * (1.0 + jax.lax.erf(q * jnp.float32(0.7071067811865476)))
    q = q.reshape(Bt, Kp, Dp)

    # fuse the two small batched matmuls against cand into one einsum:
    #   [poly ; q] (Bt, 2Kp, Dp) x cand (Bt, Np, Dp) -> (Bt, 2Kp, Np)
    pq = jnp.concatenate([poly.astype(jnp.bfloat16), q.astype(jnp.bfloat16)],
                         axis=1)
    va = jnp.einsum('bkd,bnd->bkn', pq, cand,
                    preferred_element_type=jnp.float32)               # (Bt, 2Kp, Np)
    value = va[:, :Kp, :]            # matching scores (K on sublane, N on lane)
    al = va[:, Kp:, :]               # target-aware attention logits

    # exclude synthetic context codes from the softmax over K
    if k_actual < Kp:
        krange = jax.lax.broadcasted_iota(jnp.int32, (1, Kp, Np), 1)
        al = jnp.where(krange < k_actual, al, jnp.float32(-1e30))

    # softmax over the context-code axis (sublane)
    al = al - jnp.max(al, axis=1, keepdims=True)
    e2 = jnp.exp(al)
    attn = e2 * pl.reciprocal(jnp.sum(e2, axis=1, keepdims=True), approx=True)

    # scores = sum_K(attn * value): sublane reduction -> lane-dense (Bt, Np) store
    score_ref[...] = jnp.sum(attn * value, axis=1)


# ------------------------------ wrapper ------------------------------------- #

def _round_up(x, m):
    return (x + m - 1) // m * m


def _derive_tiling(B, Hp, Dp, Np, Kp, Cp):
    """Generation-aware batch tile + VMEM limit.

    Accounts for lane/sublane padding, double-buffered streams/outputs, the
    resident weight tiles and the in-kernel intermediates.
    """
    try:
        cap = int(getattr(pltpu.get_tpu_info(), "vmem_capacity_bytes", 64 << 20))
    except Exception:
        cap = 64 << 20                       # conservative (v7x per-TC VMEM)
    vmem_limit = min(int(cap * 0.75), 100 << 20)
    budget = int(cap * 0.45)                 # headroom for compiler scratch

    lane = lambda n: _round_up(max(n, 1), 128)
    per_b = (2 * 2 * Hp * Dp                 # hist  bf16, 2 buffers
             + 2 * 2 * Np * Dp               # cand  bf16, 2 buffers
             + 2 * 4 * Hp * lane(2)          # mask/add pack f32 (lane padded), 2 buffers
             + 2 * 4 * Kp * Dp               # poly out f32, 2 buffers
             + 2 * 4 * lane(Np)              # scores out f32, 2 buffers
             + 4 * Hp * Cp                   # proj intermediate (f32)
             + 3 * 4 * Hp * lane(Kp)         # logits / exp / probs (f32)
             + 4 * 4 * Kp * Dp               # poly / q / pq intermediates
             + 3 * 4 * 2 * Kp * lane(Np))    # va / attn / products
    fixed = 2 * 2 * (Dp * Cp + Cp * lane(Kp) + Dp * Dp)   # resident bf16 weights
    limit = max(1, max(budget - fixed, per_b) // per_b)

    # valid tiles: divisors of B that are multiples of 8 (sublane-aligned 2-D
    # score store), plus B itself (full-array block is always legal).
    cands = [d for d in range(8, B + 1, 8) if B % d == 0]
    if B not in cands:
        cands.append(B)
    fitting = [c for c in cands if c <= limit] or [min(cands)]
    bt = max(fitting)
    # prefer >= 2 grid steps so v7x's two TensorCores both get work
    if B // bt < 2:
        multi = [c for c in fitting if B // c >= 2]
        if multi:
            bt = max(multi)
    return bt, vmem_limit


def miner_heads(hist, cand, his_mask_f, hcat_n, ccat_n, w_poly, codes, w_ta):
    """Fused PolyAttention + weighted scoring. Returns (poly (B,K,D), scores (B,N))."""
    B, H, D = hist.shape
    N = cand.shape[1]
    K, C = codes.shape

    # hardware-tile padding: lane dims -> 128, sublane dims -> 16 (bf16 packing)
    Dp, Cp = _round_up(D, 128), _round_up(C, 128)
    Hp, Kp, Np = _round_up(H, 16), _round_up(K, 16), _round_up(N, 16)

    # category bias: mean over candidates commuted inside the dot product
    #   mean_n cos(h, c_n) = hcat_n . mean_n(ccat_n)
    bias = jnp.einsum('bhc,bc->bh', hcat_n, jnp.mean(ccat_n, axis=1))   # (B, H)

    # fold mask + bias + fills into one (B, Hp, 2) f32 stream: w = logits*m + addc
    addc = jnp.where(his_mask_f > 0.5, bias, jnp.float32(1e-30))
    maskp = jnp.pad(his_mask_f, ((0, 0), (0, Hp - H)))
    addcp = jnp.pad(addc, ((0, 0), (0, Hp - H)), constant_values=-1e30)
    mb = jnp.stack([maskp, addcp], axis=-1)                             # (B, Hp, 2)

    pad3 = lambda x, d1, d2: jnp.pad(
        x, ((0, 0), (0, d1 - x.shape[1]), (0, d2 - x.shape[2])))
    hist_p = pad3(hist, Hp, Dp).astype(jnp.bfloat16)
    cand_p = pad3(cand, Np, Dp).astype(jnp.bfloat16)
    wp_p = jnp.pad(w_poly, ((0, Dp - D), (0, Cp - C))).astype(jnp.bfloat16)        # (Dp,Cp)
    codes_t_p = jnp.pad(codes.T, ((0, Cp - C), (0, Kp - K))).astype(jnp.bfloat16)  # (Cp,Kp)
    wta_p = jnp.pad(w_ta, ((0, Dp - D), (0, Dp - D))).astype(jnp.bfloat16)         # (Dp,Dp)

    Bt, vmem_limit = _derive_tiling(B, Hp, Dp, Np, Kp, Cp)
    grid = (B // Bt,)

    flops = 2 * B * (Hp * Dp * Cp + Hp * Cp * Kp + Kp * Hp * Dp
                     + Kp * Dp * Dp + 2 * Kp * Dp * Np)
    transc = B * (Hp * Cp + Hp * Kp + Kp * Dp + Kp * Np)
    bytes_acc = (2 * B * (Hp * Dp + Np * Dp) + 4 * B * Hp * 2
                 + 2 * (Dp * Cp + Cp * Kp + Dp * Dp)
                 + 4 * B * Kp * Dp + 4 * B * Np)

    poly_p, scores_p = pl.pallas_call(
        functools.partial(miner_fused_kernel, k_actual=K),
        out_shape=(jax.ShapeDtypeStruct((B, Kp, Dp), jnp.float32),
                   jax.ShapeDtypeStruct((B, Np), jnp.float32)),
        grid_spec=pltpu.PrefetchScalarGridSpec(
            num_scalar_prefetch=0,
            grid=grid,
            in_specs=[
                pl.BlockSpec((Bt, Hp, Dp), lambda b: (b, 0, 0)),
                pl.BlockSpec((Bt, Np, Dp), lambda b: (b, 0, 0)),
                pl.BlockSpec((Bt, Hp, 2), lambda b: (b, 0, 0)),
                pl.BlockSpec((Dp, Cp), lambda b: (0, 0)),
                pl.BlockSpec((Cp, Kp), lambda b: (0, 0)),
                pl.BlockSpec((Dp, Dp), lambda b: (0, 0)),
            ],
            out_specs=[
                pl.BlockSpec((Bt, Kp, Dp), lambda b: (b, 0, 0)),
                pl.BlockSpec((Bt, Np), lambda b: (b, 0)),
            ],
        ),
        compiler_params=pltpu.CompilerParams(
            dimension_semantics=("parallel",),
            vmem_limit_bytes=vmem_limit),
        cost_estimate=pl.CostEstimate(flops=int(flops),
                                      transcendentals=int(transc),
                                      bytes_accessed=int(bytes_acc)),
    )(hist_p, cand_p, mb, wp_p, codes_t_p, wta_p)

    # strip the hardware padding
    return poly_p[:, :K, :D], scores_p[:, :N]


# ----------------------- synthetic NewsEncoder (glue) ----------------------- #
# TODO(synk): NewsEncoder is not provided in the reference source; substituted
# with a deterministic embedding + masked-mean-pool + linear + tanh encoder.
def news_encoder(tokens, tok_mask, sapo, sapo_mask, word_emb, w_news):
    t = word_emb[tokens]                                           # (BN, L, Dw)
    tm = tok_mask.astype(jnp.float32)[..., None]
    t_pool = (t * tm).sum(1) / jnp.maximum(tm.sum(1), 1.0)
    s = word_emb[sapo]
    sm = sapo_mask.astype(jnp.float32)[..., None]
    s_pool = (s * sm).sum(1) / jnp.maximum(sm.sum(1), 1.0)
    return jnp.tanh((t_pool + s_pool) @ w_news)                    # (BN, D)


def _l2_normalize(x, eps=1e-12):
    n = jnp.sqrt(jnp.sum(x * x, axis=-1, keepdims=True))
    return x / jnp.maximum(n, eps)


# ------------------------------- Miner fwd ---------------------------------- #

@functools.partial(jax.jit, static_argnames=())
def miner_forward(params, title, title_mask, his_title, his_title_mask,
                  his_mask, sapo, sapo_mask, his_sapo, his_sapo_mask,
                  category, his_category):
    B, N, _ = title.shape
    H = his_title.shape[1]

    # candidate / history news representations (glue encoder)
    cand = news_encoder(title.reshape(B * N, -1), title_mask.reshape(B * N, -1),
                        sapo.reshape(B * N, -1), sapo_mask.reshape(B * N, -1),
                        params["word_emb"], params["w_news"]).reshape(B, N, -1)
    hist = news_encoder(his_title.reshape(B * H, -1),
                        his_title_mask.reshape(B * H, -1),
                        his_sapo.reshape(B * H, -1),
                        his_sapo_mask.reshape(B * H, -1),
                        params["word_emb"], params["w_news"]).reshape(B, H, -1)

    # category embeddings; L2-normalize the (tiny) table once, with eps so the
    # all-zero padding row stays finite. (dropout = identity in eval)
    cat_n = _l2_normalize(params["cat_emb"])
    his_cat_n = cat_n[his_category]                                # (B, H, Cd)
    cand_cat_n = cat_n[category]                                   # (B, N, Cd)

    poly, scores = miner_heads(hist, cand, his_mask.astype(jnp.float32),
                               his_cat_n, cand_cat_n,
                               params["w_poly"], params["codes"], params["w_ta"])
    return poly, scores


# ----------------------------- pure-JAX reference --------------------------- #

def reference(params, hist, his_mask, his_category, category, cand):
    cat_n = _l2_normalize(params["cat_emb"])
    hn = cat_n[his_category]
    cn = cat_n[category]
    proj = jnp.tanh(hist @ params["w_poly"])
    logits = proj @ params["codes"].T
    bias = jnp.einsum("bhc,bnc->bhn", hn, cn).mean(-1, keepdims=True)
    w = (logits + bias).transpose(0, 2, 1)
    w = jnp.where(his_mask[:, None, :], w, 1e-30)
    w = jax.nn.softmax(w, axis=-1)
    poly = w @ hist
    value = cand @ poly.transpose(0, 2, 1)
    q = jax.nn.gelu(poly @ params["w_ta"], approximate=False)
    attn = jax.nn.softmax(cand @ q.transpose(0, 2, 1), axis=-1)
    return poly, (attn * value).sum(-1)


# ---------------------------------- main ------------------------------------ #

if __name__ == "__main__":
    # small, forward-consistent shapes
    B, N, H = 2, 4, 8          # batch, num_candidates, num_clicked_news
    TL, SL = 8, 12             # title / sapo lengths
    V, Dw, D = 64, 32, 32      # vocab, word dim, news embed dim
    K, C = 4, 16               # num_context_codes, context_code_dim
    NC, Cd = 10, 8             # num categories, category embed dim (pad id = 0)

    key = jax.random.PRNGKey(0)
    ks = jax.random.split(key, 16)

    params = {
        "word_emb": jax.random.normal(ks[0], (V, Dw), jnp.float32) * 0.1,
        "w_news": jax.random.normal(ks[1], (Dw, D), jnp.float32) * 0.2,
        "w_poly": jax.random.normal(ks[2], (D, C), jnp.float32) * 0.2,
        "codes": jax.random.normal(ks[3], (K, C), jnp.float32) * 0.3,
        "w_ta": jax.random.normal(ks[4], (D, D), jnp.float32) * 0.2,
        "cat_emb": jax.random.normal(ks[5], (NC, Cd), jnp.float32)
                   .at[0].set(0.0),          # padding_idx = 0
    }

    title = jax.random.randint(ks[6], (B, N, TL), 0, V)
    his_title = jax.random.randint(ks[7], (B, H, TL), 0, V)
    sapo = jax.random.randint(ks[8], (B, N, SL), 0, V)
    his_sapo = jax.random.randint(ks[9], (B, H, SL), 0, V)

    title_mask = (jax.random.uniform(ks[10], (B, N, TL)) > 0.2).at[..., 0].set(True)
    his_title_mask = (jax.random.uniform(ks[11], (B, H, TL)) > 0.2).at[..., 0].set(True)
    sapo_mask = (jax.random.uniform(ks[12], (B, N, SL)) > 0.2).at[..., 0].set(True)
    his_sapo_mask = (jax.random.uniform(ks[13], (B, H, SL)) > 0.2).at[..., 0].set(True)
    his_mask = jnp.ones((B, H), bool).at[1, 6:].set(False)   # some padded history

    category = jax.random.randint(ks[14], (B, N), 1, NC)     # avoid pad id 0
    his_category = jax.random.randint(ks[15], (B, H), 1, NC)

    poly, scores = miner_forward(params, title, title_mask, his_title,
                                 his_title_mask, his_mask, sapo, sapo_mask,
                                 his_sapo, his_sapo_mask, category, his_category)
    jax.block_until_ready((poly, scores))

    # check against pure-JAX f32 reference (kernel uses bf16 MXU operands and
    # approx reciprocals, hence the relaxed tolerance)
    BN = B * N
    cand_ref = news_encoder(title.reshape(BN, -1), title_mask.reshape(BN, -1),
                            sapo.reshape(BN, -1), sapo_mask.reshape(BN, -1),
                            params["word_emb"], params["w_news"]).reshape(B, N, -1)
    hist_ref = news_encoder(his_title.reshape(B * H, -1),
                            his_title_mask.reshape(B * H, -1),
                            his_sapo.reshape(B * H, -1),
                            his_sapo_mask.reshape(B * H, -1),
                            params["word_emb"], params["w_news"]).reshape(B, H, -1)
    poly_r, scores_r = reference(params, hist_ref, his_mask,
                                 his_category, category, cand_ref)

    assert poly.shape == (B, K, D) and scores.shape == (B, N)
    np.testing.assert_allclose(np.asarray(poly), np.asarray(poly_r),
                               rtol=2e-2, atol=2e-2)
    np.testing.assert_allclose(np.asarray(scores), np.asarray(scores_r),
                               rtol=2e-2, atol=2e-2)
    print("KERNEL_OK")
</pallas_src>

<mosaic_0001>
module attributes {stable_mosaic.version = 11 : i64} {
  func.func @miner_fused_kernel(%arg0: i32, %arg1: memref<2x16x128xbf16, #tpu.memory_space<vmem>>, %arg2: memref<2x16x128xbf16, #tpu.memory_space<vmem>>, %arg3: memref<2x16x2xf32, #tpu.memory_space<vmem>>, %arg4: memref<128x128xbf16, #tpu.memory_space<vmem>>, %arg5: memref<128x16xbf16, #tpu.memory_space<vmem>>, %arg6: memref<128x128xbf16, #tpu.memory_space<vmem>>, %arg7: memref<2x16x128xf32, #tpu.memory_space<vmem>>, %arg8: memref<2x16xf32, #tpu.memory_space<vmem>>) attributes {dimension_semantics = [#tpu.dimension_semantics<parallel>], iteration_bounds = array<i64: 1>, scalar_prefetch = 0 : i64, scratch_operands = 0 : i64, tpu.core_type = #tpu.core_type<tc>, window_params = [{transform_indices = @transform_0, window_bounds = array<i64: 2, 16, 128>}, {transform_indices = @transform_1, window_bounds = array<i64: 2, 16, 128>}, {transform_indices = @transform_2, window_bounds = array<i64: 2, 16, 2>}, {pipeline_mode = #tpu.pipeline_mode<synchronous>, transform_indices = @transform_3, window_bounds = array<i64: 128, 128>}, {pipeline_mode = #tpu.pipeline_mode<synchronous>, transform_indices = @transform_4, window_bounds = array<i64: 128, 16>}, {pipeline_mode = #tpu.pipeline_mode<synchronous>, transform_indices = @transform_5, window_bounds = array<i64: 128, 128>}, {transform_indices = @transform_6, window_bounds = array<i64: 2, 16, 128>}, {transform_indices = @transform_7, window_bounds = array<i64: 2, 16>}]} {
    %c0 = arith.constant 0 : index
    %c0_0 = arith.constant 0 : index
    %c0_1 = arith.constant 0 : index
    %0 = vector.load %arg1[%c0, %c0_0, %c0_1] : memref<2x16x128xbf16, #tpu.memory_space<vmem>>, vector<2x16x128xbf16>
    %c0_2 = arith.constant 0 : index
    %c0_3 = arith.constant 0 : index
    %c0_4 = arith.constant 0 : index
    %1 = vector.load %arg2[%c0_2, %c0_3, %c0_4] : memref<2x16x128xbf16, #tpu.memory_space<vmem>>, vector<2x16x128xbf16>
    %c0_5 = arith.constant 0 : index
    %c0_6 = arith.constant 0 : index
    %c0_7 = arith.constant 0 : index
    %2 = vector.load %arg3[%c0_5, %c0_6, %c0_7] : memref<2x16x2xf32, #tpu.memory_space<vmem>>, vector<2x16x2xf32>
    %c0_8 = arith.constant 0 : index
    %c0_9 = arith.constant 0 : index
    %3 = vector.load %arg4[%c0_8, %c0_9] : memref<128x128xbf16, #tpu.memory_space<vmem>>, vector<128x128xbf16>
    %c0_10 = arith.constant 0 : index
    %c0_11 = arith.constant 0 : index
    %4 = vector.load %arg5[%c0_10, %c0_11] : memref<128x16xbf16, #tpu.memory_space<vmem>>, vector<128x16xbf16>
    %c0_12 = arith.constant 0 : index
    %c0_13 = arith.constant 0 : index
    %5 = vector.load %arg6[%c0_12, %c0_13] : memref<128x128xbf16, #tpu.memory_space<vmem>>, vector<128x128xbf16>
    %6 = vector.shape_cast %0 : vector<2x16x128xbf16> to vector<32x128xbf16>
    %cst = arith.constant dense<0.000000e+00> : vector<32x128xf32>
    %7 = tpu.matmul %6, %3, %cst {dimension_numbers = #tpu.dot_dimension_numbers<[1], [0], [0], [1], [0, 0, 1, 1], [], []>} : vector<32x128xbf16>, vector<128x128xbf16>, vector<32x128xf32> -> vector<32x128xf32>
    %8 = math.tanh %7 : vector<32x128xf32>
    %9 = arith.truncf %8 : vector<32x128xf32> to vector<32x128xbf16>
    %cst_14 = arith.constant dense<0.000000e+00> : vector<32x16xf32>
    %10 = tpu.matmul %9, %4, %cst_14 {dimension_numbers = #tpu.dot_dimension_numbers<[1], [0], [0], [1], [0, 0, 1, 1], [], []>} : vector<32x128xbf16>, vector<128x16xbf16>, vector<32x16xf32> -> vector<32x16xf32>
    %11 = vector.shape_cast %10 : vector<32x16xf32> to vector<2x16x16xf32>
    %12 = vector.extract_strided_slice %2 {offsets = [0, 0, 0], sizes = [2, 16, 1], strides = [1, 1, 1]} : vector<2x16x2xf32> to vector<2x16x1xf32>
    %13 = vector.extract_strided_slice %2 {offsets = [0, 0, 1], sizes = [2, 16, 1], strides = [1, 1, 1]} : vector<2x16x2xf32> to vector<2x16x1xf32>
    %14 = vector.broadcast %12 : vector<2x16x1xf32> to vector<2x16x16xf32>
    %15 = arith.mulf %11, %14 : vector<2x16x16xf32>
    %16 = vector.broadcast %13 : vector<2x16x1xf32> to vector<2x16x16xf32>
    %17 = arith.addf %15, %16 : vector<2x16x16xf32>
    %cst_15 = arith.constant dense<0xFF800000> : vector<2x16xf32>
    %18 = vector.multi_reduction <maximumf>, %17, %cst_15 [1] : vector<2x16x16xf32> to vector<2x16xf32>
    %19 = vector.shape_cast %18 : vector<2x16xf32> to vector<2x1x16xf32>
    %20 = vector.broadcast %19 : vector<2x1x16xf32> to vector<2x16x16xf32>
    %21 = arith.subf %17, %20 : vector<2x16x16xf32>
    %22 = math.exp %21 : vector<2x16x16xf32>
    %cst_16 = arith.constant dense<0.000000e+00> : vector<2x16xf32>
    %23 = vector.multi_reduction <add>, %22, %cst_16 [1] : vector<2x16x16xf32> to vector<2x16xf32>
    %24 = vector.shape_cast %23 : vector<2x16xf32> to vector<2x1x16xf32>
    %25 = tpu.reciprocal %24 {approx = true} : vector<2x1x16xf32> -> vector<2x1x16xf32>
    %26 = vector.broadcast %25 : vector<2x1x16xf32> to vector<2x16x16xf32>
    %27 = arith.mulf %22, %26 : vector<2x16x16xf32>
    %28 = arith.truncf %27 : vector<2x16x16xf32> to vector<2x16x16xbf16>
    "tpu.trace_start"() <{level = 10 : i32, message = "bhk,bhd->bkd"}> : () -> ()
    %cst_17 = arith.constant dense<0.000000e+00> : vector<2x16x128xf32>
    %29 = tpu.matmul %28, %0, %cst_17 {dimension_numbers = #tpu.dot_dimension_numbers<[1], [1], [2], [2], [0, 0, 0, 2, 1, 2], [0], [0]>} : vector<2x16x16xbf16>, vector<2x16x128xbf16>, vector<2x16x128xf32> -> vector<2x16x128xf32>
    "tpu.trace_stop"() : () -> ()
    %c0_18 = arith.constant 0 : index
    %c0_19 = arith.constant 0 : index
    %c0_20 = arith.constant 0 : index
    %30 = vector.load %arg7[%c0_18, %c0_19, %c0_20] : memref<2x16x128xf32, #tpu.memory_space<vmem>>, vector<2x16x128xf32>
    tpu.vector_store %arg7[%c0_18, %c0_19, %c0_20], %29 {strides = array<i32>} : memref<2x16x128xf32, #tpu.memory_space<vmem>>, vector<2x16x128xf32>,
    %31 = vector.shape_cast %29 : vector<2x16x128xf32> to vector<32x128xf32>
    %32 = arith.truncf %31 : vector<32x128xf32> to vector<32x128xbf16>
    %cst_21 = arith.constant dense<0.000000e+00> : vector<32x128xf32>
    %33 = tpu.matmul %32, %5, %cst_21 {dimension_numbers = #tpu.dot_dimension_numbers<[1], [0], [0], [1], [0, 0, 1, 1], [], []>} : vector<32x128xbf16>, vector<128x128xbf16>, vector<32x128xf32> -> vector<32x128xf32>
    %cst_22 = arith.constant 5.000000e-01 : f32
    %34 = vector.broadcast %cst_22 : f32 to vector<32x128xf32>
    %35 = arith.mulf %34, %33 : vector<32x128xf32>
    %cst_23 = arith.constant 0.707106769 : f32
    %36 = vector.broadcast %cst_23 : f32 to vector<32x128xf32>
    %37 = arith.mulf %33, %36 : vector<32x128xf32>
    %38 = math.erf %37 : vector<32x128xf32>
    %cst_24 = arith.constant 1.000000e+00 : f32
    %39 = vector.broadcast %cst_24 : f32 to vector<32x128xf32>
    %40 = arith.addf %39, %38 : vector<32x128xf32>
    %41 = arith.mulf %35, %40 : vector<32x128xf32>
    %42 = vector.shape_cast %41 : vector<32x128xf32> to vector<2x16x128xf32>
    %43 = arith.truncf %29 : vector<2x16x128xf32> to vector<2x16x128xbf16>
    %44 = arith.truncf %42 : vector<2x16x128xf32> to vector<2x16x128xbf16>
    %45 = tpu.concatenate %43, %44 in 1 : vector<2x16x128xbf16>, vector<2x16x128xbf16> -> vector<2x32x128xbf16>
    "tpu.trace_start"() <{level = 10 : i32, message = "bkd,bnd->bkn"}> : () -> ()
    %cst_25 = arith.constant dense<0.000000e+00> : vector<2x32x16xf32>
    %46 = tpu.matmul %45, %1, %cst_25 {dimension_numbers = #tpu.dot_dimension_numbers<[2], [2], [1], [1], [0, 0, 0, 1, 1, 1], [0], [0]>} : vector<2x32x128xbf16>, vector<2x16x128xbf16>, vector<2x32x16xf32> -> vector<2x32x16xf32>
    "tpu.trace_stop"() : () -> ()
    %47 = vector.extract_strided_slice %46 {offsets = [0, 0, 0], sizes = [2, 16, 16], strides = [1, 1, 1]} : vector<2x32x16xf32> to vector<2x16x16xf32>
    %48 = vector.extract_strided_slice %46 {offsets = [0, 16, 0], sizes = [2, 16, 16], strides = [1, 1, 1]} : vector<2x32x16xf32> to vector<2x16x16xf32>
    %49 = tpu.iota {dimensions = array<i32: 1>} : vector<1x16x16xi32>
    %c4_i32 = arith.constant 4 : i32
    %50 = vector.broadcast %c4_i32 : i32 to vector<1x16x16xi32>
    %51 = arith.cmpi slt, %49, %50 : vector<1x16x16xi32>
    %cst_26 = arith.constant -1.000000e+30 : f32
    %52 = vector.shape_cast %51 : vector<1x16x16xi1> to vector<1x16x16xi1>
    %53 = vector.broadcast %52 : vector<1x16x16xi1> to vector<2x16x16xi1>
    %54 = vector.broadcast %cst_26 : f32 to vector<2x16x16xf32>
    %55 = arith.select %53, %48, %54 : vector<2x16x16xi1>, vector<2x16x16xf32>
    %cst_27 = arith.constant dense<0xFF800000> : vector<2x16xf32>
    %56 = vector.multi_reduction <maximumf>, %55, %cst_27 [1] : vector<2x16x16xf32> to vector<2x16xf32>
    %57 = vector.shape_cast %56 : vector<2x16xf32> to vector<2x1x16xf32>
    %58 = vector.broadcast %57 : vector<2x1x16xf32> to vector<2x16x16xf32>
    %59 = arith.subf %55, %58 : vector<2x16x16xf32>
    %60 = math.exp %59 : vector<2x16x16xf32>
    %cst_28 = arith.constant dense<0.000000e+00> : vector<2x16xf32>
    %61 = vector.multi_reduction <add>, %60, %cst_28 [1] : vector<2x16x16xf32> to vector<2x16xf32>
    %62 = vector.shape_cast %61 : vector<2x16xf32> to vector<2x1x16xf32>
    %63 = tpu.reciprocal %62 {approx = true} : vector<2x1x16xf32> -> vector<2x1x16xf32>
    %64 = vector.broadcast %63 : vector<2x1x16xf32> to vector<2x16x16xf32>
    %65 = arith.mulf %60, %64 : vector<2x16x16xf32>
    %66 = arith.mulf %65, %47 : vector<2x16x16xf32>
    %cst_29 = arith.constant dense<0.000000e+00> : vector<2x16xf32>
    %67 = vector.multi_reduction <add>, %66, %cst_29 [1] : vector<2x16x16xf32> to vector<2x16xf32>
    %c0_30 = arith.constant 0 : index
    %c0_31 = arith.constant 0 : index
    %68 = vector.load %arg8[%c0_30, %c0_31] : memref<2x16xf32, #tpu.memory_space<vmem>>, vector<2x16xf32>
    tpu.vector_store %arg8[%c0_30, %c0_31], %67 {strides = array<i32>} : memref<2x16xf32, #tpu.memory_space<vmem>>, vector<2x16xf32>,
    return
  }
  func.func @transform_0(%arg0: i32) -> (i32, i32, i32) {
    %c0_i32 = arith.constant 0 : i32
    %c0_i32_0 = arith.constant 0 : i32
    %c0_i32_1 = arith.constant 0 : i32
    return %arg0, %c0_i32, %c0_i32_0 : i32, i32, i32
  }
  func.func @transform_1(%arg0: i32) -> (i32, i32, i32) {
    %c0_i32 = arith.constant 0 : i32
    %c0_i32_0 = arith.constant 0 : i32
    %c0_i32_1 = arith.constant 0 : i32
    return %arg0, %c0_i32, %c0_i32_0 : i32, i32, i32
  }
  func.func @transform_2(%arg0: i32) -> (i32, i32, i32) {
    %c0_i32 = arith.constant 0 : i32
    %c0_i32_0 = arith.constant 0 : i32
    %c0_i32_1 = arith.constant 0 : i32
    return %arg0, %c0_i32, %c0_i32_0 : i32, i32, i32
  }
  func.func @transform_3(%arg0: i32) -> (i32, i32) {
    %c0_i32 = arith.constant 0 : i32
    %c0_i32_0 = arith.constant 0 : i32
    %c0_i32_1 = arith.constant 0 : i32
    return %c0_i32, %c0_i32_0 : i32, i32
  }
  func.func @transform_4(%arg0: i32) -> (i32, i32) {
    %c0_i32 = arith.constant 0 : i32
    %c0_i32_0 = arith.constant 0 : i32
    %c0_i32_1 = arith.constant 0 : i32
    return %c0_i32, %c0_i32_0 : i32, i32
  }
  func.func @transform_5(%arg0: i32) -> (i32, i32) {
    %c0_i32 = arith.constant 0 : i32
    %c0_i32_0 = arith.constant 0 : i32
    %c0_i32_1 = arith.constant 0 : i32
    return %c0_i32, %c0_i32_0 : i32, i32
  }
  func.func @transform_6(%arg0: i32) -> (i32, i32, i32) {
    %c0_i32 = arith.constant 0 : i32
    %c0_i32_0 = arith.constant 0 : i32
    %c0_i32_1 = arith.constant 0 : i32
    return %arg0, %c0_i32, %c0_i32_0 : i32, i32, i32
  }
  func.func @transform_7(%arg0: i32) -> (i32, i32) {
    %c0_i32 = arith.constant 0 : i32
    %c0_i32_0 = arith.constant 0 : i32
    return %arg0, %c0_i32 : i32, i32
  }
}

</mosaic_0001>

<bundles_post_ra>
// kernel: miner_forward.1
= control target key start
LH: loop header
LB: loop body
LE: loop exit
PB: predicated region body
PF: predicated region fallthrough
CT: control target
= control target key end

     0   :  { %s1352_s0 = inlined_call_operand.vmem [shape: bf16[2,16,128], index: 0, kind: input, shape index: {}]   ;;  %s1353_s1 = inlined_call_operand.vmem [shape: bf16[2,16,128], index: 1, kind: input, shape index: {}]   ;;  %s1354_s2 = inlined_call_operand.vmem [shape: f32[2,16,2], index: 2, kind: input, shape index: {}]   ;;  %s1355_s3 = inlined_call_operand.vmem [shape: bf16[128,128], index: 3, kind: input, shape index: {}]   ;;  %s1356_s4 = inlined_call_operand.vmem [shape: bf16[128,16], index: 4, kind: input, shape index: {}]   ;;  %s1357_s5 = inlined_call_operand.vmem [shape: bf16[128,128], index: 5, kind: input, shape index: {}]   ;;  %s1358_s6 = inlined_call_operand.vmem [shape: f32[2,16,128], index: 6, kind: output, shape index: {0}]   ;;  %s1359_s7 = inlined_call_operand.hbm [shape: f32[2,16], index: 7, kind: output, shape index: {1}]  }
   0x1   :  { %v996_v0 = vld [vmem:[%s1355_s3 + $0x38] sm:$0xff]  ;;  %v995_v1 = vld [vmem:[%s1355_s3 + $0x30] sm:$0xff]  ;;  %v985_v2 = vld [vmem:[%s1352_s0] sm:$0xff] }
   0x2   :  { %147 = vmatpush.bf16.msra.mxu0 %v996_v0 }
   0x3   :  { %13 = vsyncpa [#allocation3], 0  ;;  %374 = vmatpush.bf16.msra.mxu2 %v985_v2  ;;  %v994_v3 = vld [vmem:[%s1355_s3 + $0x28] sm:$0xff]  ;;  %v993_v4 = vld [vmem:[%s1355_s3 + $0x20] sm:$0xff]  ;;  %v1087_v18 = vmov 1   ;;  %v1088_v21 = vmov 0  }
   0x4   :  { %v992_v5 = vld [vmem:[%s1355_s3 + $0x18] sm:$0xff]  ;;  %v991_v7 = vld [vmem:[%s1355_s3 + $0x10] sm:$0xff]  ;;  %v990_v9 = vld [vmem:[%s1355_s3 + $0x8] sm:$0xff]  ;;  %1018 = vset.pattern.permute.xlu1 %v1087_v18  ;;  %1017 = vset.pattern.permute.xlu0 %v1088_v21  ;;  %vm283_vm0 = vcmask 130048   ;;  %s856_s20 = sshll.u32 %s1359_s7, 4  ;;  %s857_s20 = int_to_ptr.hbm [resolvable:$true] %s856_s20 }
   0x5   :  { %v1004_v6 = vld [vmem:[%s1356_s4 + $0x38] sm:$0xff]  ;;  %v1003_v8 = vld [vmem:[%s1356_s4 + $0x30] sm:$0xff]  ;;  %v1002_v10 = vld [vmem:[%s1356_s4 + $0x28] sm:$0xff]  ;;  %1019 = vset.pattern.permute.xlu2 %v1088_v21 }
   0x6   :  { %148 = vmatpush.bf16.msra.mxu0 %v995_v1  ;;  %220 = vmatpush.bf16.msra.mxu1 %v1004_v6  ;;  %v989_v11 = vld [vmem:[%s1355_s3] sm:$0xff]  ;;  %v986_v13 = vld [vmem:[%s1352_s0 + $0x8] sm:$0xff]  ;;  %v1000_v14 = vld [vmem:[%s1356_s4 + $0x18] sm:$0xff] }
   0x7   :  { %v1001_v12 = vld [vmem:[%s1356_s4 + $0x20] sm:$0xff]  ;;  %v999_v15 = vld [vmem:[%s1356_s4 + $0x10] sm:$0xff]  ;;  %v998_v16 = vld [vmem:[%s1356_s4 + $0x8] sm:$0xff] }
   0x8   :  { %v35_v17 = vld [vmem:[%s1354_s2] sm:$0xff]  ;;  %v36_v20 = vld [vmem:[%s1354_s2 + $0x8] sm:$0xff]  ;;  %v38_v22 = vld [vmem:[%s1354_s2 + $0x18] sm:$0xff] }
   0x9   :  { %v997_v19 = vld [vmem:[%s1356_s4] sm:$0xff]  ;;  %264 = vperm.xlu1 %1018, %v35_v17   ;;  %241 = vperm.xlu0 %1017, %v35_v17   ;;  %v37_v24 = vld [vmem:[%s1354_s2 + $0x10] sm:$0xff] }
   0xa   :  { %149 = vmatpush.bf16.msra.mxu0 %v994_v3  ;;  %221 = vmatpush.bf16.msra.mxu1 %v1003_v8 }
   0xb   :  { %251 = vperm.xlu2 %1019, %v37_v24  }
   0xe   :  { %150 = vmatpush.bf16.msra.mxu0 %v993_v4  ;;  %222 = vmatpush.bf16.msra.mxu1 %v1002_v10 }
  0x11   :  { %268 = vperm.xlu1 %1018, %v36_v20   ;;  %246 = vperm.xlu0 %1017, %v36_v20  }
  0x12   :  { %151 = vmatpush.bf16.msra.mxu0 %v992_v5  ;;  %223 = vmatpush.bf16.msra.mxu1 %v1001_v12 }
  0x13   :  { %256 = vperm.xlu2 %1019, %v38_v22  }
  0x16   :  { %152 = vmatpush.bf16.msra.mxu0 %v991_v7  ;;  %224 = vmatpush.bf16.msra.mxu1 %v1000_v14 }
  0x19   :  { %276 = vperm.xlu1 %1018, %v38_v22   ;;  %1020 = vset.pattern.permute.xlu0 %v1087_v18 }
  0x1a   :  { %153 = vmatpush.bf16.msra.mxu0 %v990_v9  ;;  %225 = vmatpush.bf16.msra.mxu1 %v999_v15 }
  0x1b   :  { %272 = vperm.xlu0 %1020, %v37_v24  }
  0x1e   :  { %154 = vmatpush.bf16.msra.mxu0 %v989_v11  ;;  %226 = vmatpush.bf16.msra.mxu1 %v998_v16 }
  0x21   :  { %155 = vmatmul.bf16.vlgmr.msra.gmra.mxu0 %v985_v2 }
  0x22   :  { %413 = vmatpush.bf16.msrb.mxu0 %v986_v13  ;;  %227 = vmatpush.bf16.msra.mxu1 %v997_v19 }
  0x31   :  { %160 = vmatmul.bf16.gmra.mxu0 %v986_v13 }
  0x65   :  { %v252_v44 = vpop.permute.xlu2 %251 }
  0x6d   :  { %v257_v55 = vpop.permute.xlu2 %256 }
  0x7b   :  { %v242_v34 = vpop.permute.xlu0 %241  ;;  %v265_v35 = vpop.permute.xlu1 %264 }
  0x83   :  { %v247_v38 = vpop.permute.xlu0 %246  ;;  %v269_v42 = vpop.permute.xlu1 %268 }
  0x8b   :  { %v277_v60 = vpop.permute.xlu1 %276 }
  0x8d   :  { %v273_v54 = vpop.permute.xlu0 %272 }
  0x9e   :  { %v156_v23 = vpop.f32.mrf.mxu0 }
  0x9f   :  { %1021 = vtanh.f32 %v156_v23 }
  0xa5   :  { %v1022_v26 = vpop.eup %1021 }
  0xa6   :  { %v158_v25 = vpop.f32.mrf.mxu0 }
  0xa7   :  { %1023 = vtanh.f32 %v158_v25 }
  0xad   :  { %v1024_v27 = vpop.eup %1023 }
  0xae   :  { %v161_v28 = vpop.f32.mrf.mxu0  ;;  %v170_v29 = vpack.c.bf16 %v1024_v27, %v1022_v26 }
  0xaf   :  { %1025 = vtanh.f32 %v161_v28 }
  0xb0   :  { %228 = vmatmul.bf16.vlgmr.msra.gmra.mxu1 %v170_v29 }
  0xb5   :  { %v1026_v31 = vpop.eup %1025 }
  0xb6   :  { %v163_v30 = vpop.f32.mrf.mxu0 }
  0xb7   :  { %1027 = vtanh.f32 %v163_v30 }
  0xbd   :  { %v1028_v32 = vpop.eup %1027 }
  0xbe   :  { %v171_v33 = vpack.c.bf16 %v1028_v32, %v1026_v31 }
  0xc0   :  { %233 = vmatmul.bf16.gmra.mxu1 %v171_v33 }
 0x12d   :  { %v229_v36 = vpop.f32.mrf.mxu1 }
 0x12e   :  { %v259_v37 = vmul.f32 %v242_v34, %v229_v36 }
 0x130   :  { %v279_v40 = vadd.f32 %v265_v35, %v259_v37 }
 0x132   :  { %v284_v45 = vsel %vm283_vm0, %v279_v40, -inf }
 0x135   :  { %v231_v39 = vpop.f32.mrf.mxu1 }
 0x136   :  { %v260_v41 = vmul.f32 %v247_v38, %v231_v39 }
 0x138   :  { %v280_v43 = vadd.f32 %v269_v42, %v260_v41 }
 0x13a   :  { %v285_v46 = vsel %vm283_vm0, %v280_v43, -inf }
 0x13b   :  { %v286_v47 = vmax.f32 %v284_v45, %v285_v46 }
 0x13d   :  { %v287_v48 = vrot.slane %v286_v47, 4  ;;  %v234_v49 = vpop.f32.mrf.mxu1 }
 0x13e   :  { %v261_v52 = vmul.f32 %v252_v44, %v234_v49 }
 0x13f   :  { %v288_v50 = vmax.f32 %v286_v47, %v287_v48 }
 0x140   :  { %v281_v58 = vadd.f32 %v273_v54, %v261_v52  ;;  %v1012_v54 = vld [vmem:[%s1357_s5 + $0x38] sm:$0xff] }
 0x141   :  { %v289_v51 = vrot.slane %v288_v50, 2  ;;  %474 = vmatpush.bf16.msrb.mxu2 %v1012_v54 }
 0x142   :  { %v293_v1 = vsel %vm283_vm0, %v281_v58, -inf }
 0x143   :  { %v290_v53 = vmax.f32 %v288_v50, %v289_v51 }
 0x145   :  { %v291_v56 = vrot.slane %v290_v53, 1  ;;  %v236_v57 = vpop.f32.mrf.mxu1 }
 0x146   :  { %v262_v59 = vmul.f32 %v257_v55, %v236_v57  ;;  %v1011_v55 = vld [vmem:[%s1357_s5 + $0x30] sm:$0xff]  ;;  %v1010_v57 = vld [vmem:[%s1357_s5 + $0x28] sm:$0xff] }
 0x147   :  { %v292_v61 = vmax.f32 %v290_v53, %v291_v56  ;;  %475 = vmatpush.bf16.msrb.mxu2 %v1011_v55 }
 0x148   :  { %v282_v62 = vadd.f32 %v277_v60, %v262_v59  ;;  %v1008_v59 = vld [vmem:[%s1357_s5 + $0x18] sm:$0xff] }
 0x149   :  { %v302_v63 = vsub.f32 %v279_v40, %v292_v61  ;;  %v303_v0 = vsub.f32 %v280_v43, %v292_v61  ;;  %v1007_v61 = vld [vmem:[%s1357_s5 + $0x10] sm:$0xff] }
 0x14a   :  { %v294_v2 = vsel %vm283_vm0, %v282_v62, -inf }
 0x14b   :  { %v306_v3 = vmul.f32 1.442695, %v302_v63  ;;  %v308_v4 = vmul.f32 1.442695, %v303_v0  ;;  %v295_v5 = vmax.f32 %v293_v1, %v294_v2  ;;  %476 = vmatpush.bf16.msrb.mxu2 %v1010_v57  ;;  %v1005_v63 = vld [vmem:[%s1357_s5] sm:$0xff] }
 0x14c   :  { %v987_v0 = vld [vmem:[%s1353_s1] sm:$0xff] }
 0x14d   :  { %1029 = vpow2.f32 %v306_v3  ;;  %v296_v6 = vrot.slane %v295_v5, 4  ;;  %714 = vmatpush.bf16.xpose.msra.mxu3 %v987_v0 }
 0x14e   :  { %1031 = vpow2.f32 %v308_v4 }
 0x14f   :  { %v297_v7 = vmax.f32 %v295_v5, %v296_v6 }
 0x151   :  { %v298_v8 = vrot.slane %v297_v7, 2 }
 0x153   :  { %v1030_v9 = vpop.eup %1029  ;;  %v299_v10 = vmax.f32 %v297_v7, %v298_v8 }
 0x154   :  { %v1032_v11 = vpop.eup %1031  ;;  %v314_v12 = vsel %vm283_vm0, %v1030_v9, 0.0 }
 0x155   :  { %v315_v13 = vsel %vm283_vm0, %v1032_v11, 0.0  ;;  %v300_v14 = vrot.slane %v299_v10, 1 }
 0x156   :  { %v316_v15 = vadd.f32 %v315_v13, %v314_v12 }
 0x157   :  { %v301_v16 = vmax.f32 %v299_v10, %v300_v14 }
 0x158   :  { %v317_v17 = vrot.slane %v316_v15, 4 }
 0x159   :  { %v304_v18 = vsub.f32 %v281_v58, %v301_v16  ;;  %v305_v19 = vsub.f32 %v282_v62, %v301_v16  ;;  %v1009_v58 = vld [vmem:[%s1357_s5 + $0x20] sm:$0xff]  ;;  %v1006_v62 = vld [vmem:[%s1357_s5 + $0x8] sm:$0xff] }
 0x15a   :  { %v318_v20 = vadd.f32 %v317_v17, %v316_v15  ;;  %477 = vmatpush.bf16.msrb.mxu2 %v1009_v58 }
 0x15b   :  { %v310_v21 = vmul.f32 1.442695, %v304_v18  ;;  %v312_v22 = vmul.f32 1.442695, %v305_v19 }
 0x15c   :  { %v319_v23 = vrot.slane %v318_v20, 2 }
 0x15d   :  { %1033 = vpow2.f32 %v310_v21 }
 0x15e   :  { %1035 = vpow2.f32 %v312_v22  ;;  %v320_v24 = vadd.f32 %v319_v23, %v318_v20  ;;  %478 = vmatpush.bf16.msrb.mxu2 %v1008_v59 }
 0x160   :  { %v321_v25 = vrot.slane %v320_v24, 1 }
 0x162   :  { %v322_v26 = vadd.f32 %v321_v25, %v320_v24  ;;  %479 = vmatpush.bf16.msrb.mxu2 %v1007_v61 }
 0x163   :  { %v1034_v27 = vpop.eup %1033 }
 0x164   :  { %v1036_v28 = vpop.eup %1035  ;;  %v323_v29 = vsel %vm283_vm0, %v1034_v27, 0.0  ;;  %1037 = vrcp.f32 %v322_v26 }
 0x165   :  { %v324_v30 = vsel %vm283_vm0, %v1036_v28, 0.0 }
 0x166   :  { %v325_v31 = vadd.f32 %v324_v30, %v323_v29  ;;  %480 = vmatpush.bf16.msrb.mxu2 %v1006_v62 }
 0x168   :  { %v326_v32 = vrot.slane %v325_v31, 4 }
 0x16a   :  { %v1038_v33 = vpop.eup %1037  ;;  %v327_v34 = vadd.f32 %v326_v32, %v325_v31  ;;  %481 = vmatpush.bf16.msrb.mxu2 %v1005_v63 }
 0x16b   :  { %v334_v35 = vmul.f32 %v1038_v33, %v1030_v9  ;;  %v335_v36 = vmul.f32 %v1038_v33, %v1032_v11 }
 0x16c   :  { %v328_v37 = vrot.slane %v327_v34, 2 }
 0x16d   :  { %v338_v38 = vpack.c.bf16 %v334_v35, %v334_v35  ;;  %v339_v39 = vpack.c.bf16 %v335_v36, %v335_v36 }
 0x16e   :  { %v329_v40 = vadd.f32 %v328_v37, %v327_v34 }
 0x16f   :  { %v344_v41 = vunpack.c.l.b16 %v338_v38  ;;  %v345_v42 = vunpack.c.l.b16 %v339_v39 }
 0x170   :  { %v330_v43 = vrot.slane %v329_v40, 1 }
 0x171   :  { %v346_v44 = vpack.c.b16 %v345_v42, %v344_v41 }
 0x172   :  { %v331_v45 = vadd.f32 %v330_v43, %v329_v40 }
 0x173   :  { %348 = vxpose.xlu2.c.b16.start.end [1/1] (short) (narrow) %v346_v44, 16 }
 0x174   :  { %1039 = vrcp.f32 %v331_v45 }
 0x17a   :  { %v1040_v46 = vpop.eup %1039 }
 0x17b   :  { %v336_v47 = vmul.f32 %v1040_v46, %v1034_v27  ;;  %v337_v48 = vmul.f32 %v1040_v46, %v1036_v28 }
 0x17d   :  { %v340_v49 = vpack.c.bf16 %v336_v47, %v336_v47  ;;  %v341_v50 = vpack.c.bf16 %v337_v48, %v337_v48 }
 0x17f   :  { %v383_v51 = vunpack.c.l.b16 %v340_v49  ;;  %v384_v52 = vunpack.c.l.b16 %v341_v50 }
 0x181   :  { %v385_v53 = vpack.c.b16 %v384_v52, %v383_v51 }
 0x183   :  { %387 = vxpose.xlu1.c.b16.start.end [1/1] (short) (narrow) %v385_v53, 16 }
 0x214   :  { %v356_v56 = vpop.trf.xlu2 }
 0x215   :  { %939 = vmatmul.msk.bf16.vlgmr.msra.gmra.mxu2 %vm283_vm0, %v356_v56 }
 0x22f   :  { %v395_v60 = vpop.trf.xlu1 }
 0x230   :  { %940 = vmatmul.msk.bf16.vlgmr.msrb.gmra.mxu0 %vm283_vm0, %v395_v60 }
 0x298   :  { %v376_v1 = vpop.f32.mrf.mxu2 }
 0x299   :  { %420 = vst [vmem:[%s1358_s6] sm:$0xff] %v376_v1  ;;  %v669_v2 = vpack.c.bf16 %v376_v1, %v376_v1 }
 0x29b   :  { %v681_v6 = vunpack.c.l.b16 %v669_v2 }
 0x2a0   :  { %v378_v3 = vpop.f32.mrf.mxu2 }
 0x2a1   :  { %421 = vst [vmem:[%s1358_s6 + $0x8] sm:$0xff] %v378_v3  ;;  %v424_v4 = vpack.c.bf16 %v378_v3, %v376_v1  ;;  %v670_v5 = vpack.c.bf16 %v378_v3, %v378_v3 }
 0x2a3   :  { %482 = vmatmul.bf16.vlgmr.msrb.gmra.mxu2 %v424_v4  ;;  %v682_v7 = vunpack.c.l.b16 %v670_v5 }
 0x2a5   :  { %v685_v8 = vpack.c.b16 %v682_v7, %v681_v6 }
 0x2a7   :  { %715 = vmatmul.bf16.vlgmr.msra.gmra.mxu3 %v685_v8 }
 0x2ad   :  { %v415_v9 = vpop.f32.mrf.mxu0 }
 0x2ae   :  { %422 = vst [vmem:[%s1358_s6 + $0x10] sm:$0xff] %v415_v9  ;;  %v671_v10 = vpack.c.bf16 %v415_v9, %v415_v9 }
 0x2b0   :  { %v1243_v12 = vunpack.c.l.b16 %v671_v10 }
 0x2b5   :  { %v417_v11 = vpop.f32.mrf.mxu0 }
 0x2b6   :  { %423 = vst [vmem:[%s1358_s6 + $0x18] sm:$0xff] %v417_v11  ;;  %v672_v13 = vpack.c.bf16 %v417_v11, %v417_v11  ;;  %v425_v14 = vpack.c.bf16 %v417_v11, %v415_v9 }
 0x2b8   :  { %v1248_v15 = vunpack.c.l.b16 %v672_v13  ;;  %487 = vmatmul.bf16.gmra.mxu2 %v425_v14 }
 0x2ba   :  { %v686_v16 = vpack.c.b16 %v1248_v15, %v1243_v12  ;;  %v1089_v12 = vmov -inf  }
 0x2bb   :  { %v765_v15 = vsel %vm283_vm0, -1e+30, %v1089_v12 }
 0x326   :  { %v1252_v17 = vpop.f32.mrf.mxu2 }
 0x327   :  { %v1255_v18 = vmul.f32 0.70710677, %v1252_v17 }
 0x329   :  { %v501_v19 = vmul.f32 %v1255_v18, %v1255_v18 }
 0x32b   :  { %v502_v20 = vmin.f32 %v501_v19, 16.0 }
 0x32d   :  { %v503_v21 = vmul.f32 2.1237322e-06, %v502_v20  ;;  %v514_v22 = vmul.f32 3.8918573e-05, %v502_v20 }
 0x32e   :  { %v1259_v23 = vpop.f32.mrf.mxu2 }
 0x32f   :  { %v504_v24 = vadd.f32 0.00028619796, %v503_v21  ;;  %v515_v25 = vadd.f32 0.001143296, %v514_v22  ;;  %v1262_v26 = vmul.f32 0.70710677, %v1259_v23 }
 0x331   :  { %v505_v27 = vmul.f32 %v504_v24, %v502_v20  ;;  %v516_v28 = vmul.f32 %v515_v25, %v502_v20  ;;  %v541_v29 = vmul.f32 %v1262_v26, %v1262_v26 }
 0x333   :  { %v506_v30 = vadd.f32 0.0036580483, %v505_v27  ;;  %v517_v31 = vadd.f32 0.014752088, %v516_v28  ;;  %v1266_v32 = vmin.f32 %v541_v29, 16.0 }
 0x335   :  { %v518_v33 = vmul.f32 %v517_v31, %v502_v20  ;;  %v507_v34 = vmul.f32 %v506_v30, %v502_v20  ;;  %v543_v35 = vmul.f32 2.1237322e-06, %v1266_v32  ;;  %v554_v36 = vmul.f32 3.8918573e-05, %v1266_v32 }
 0x337   :  { %v519_v37 = vadd.f32 0.112945676, %v518_v33  ;;  %v544_v38 = vadd.f32 0.00028619796, %v543_v35  ;;  %v555_v39 = vadd.f32 0.001143296, %v554_v36 }
 0x338   :  { %v508_v41 = vadd.f32 0.05243302, %v507_v34 }
 0x339   :  { %v520_v40 = vmul.f32 %v519_v37, %v502_v20  ;;  %v545_v42 = vmul.f32 %v544_v38, %v1266_v32  ;;  %v556_v43 = vmul.f32 %v555_v39, %v1266_v32 }
 0x33a   :  { %v509_v50 = vmul.f32 %v508_v41, %v502_v20 }
 0x33b   :  { %v521_v44 = vadd.f32 0.4994258, %v520_v40  ;;  %v1272_v45 = vpop.f32.mrf.mxu2  ;;  %v546_v46 = vadd.f32 0.0036580483, %v545_v42  ;;  %v557_v47 = vadd.f32 0.014752088, %v556_v43 }
 0x33c   :  { %v1275_v49 = vmul.f32 0.70710677, %v1272_v45  ;;  %v510_v56 = vadd.f32 0.18741608, %v509_v50 }
 0x33d   :  { %v522_v48 = vmul.f32 %v521_v44, %v502_v20  ;;  %v558_v51 = vmul.f32 %v557_v47, %v1266_v32  ;;  %v547_v53 = vmul.f32 %v546_v46, %v1266_v32 }
 0x33e   :  { %v581_v54 = vmul.f32 %v1275_v49, %v1275_v49  ;;  %v511_v0 = vmul.f32 %v510_v56, %v502_v20 }
 0x33f   :  { %v523_v52 = vadd.f32 1.0, %v522_v48  ;;  %v559_v55 = vadd.f32 0.112945676, %v558_v51  ;;  %v548_v59 = vadd.f32 0.05243302, %v547_v53 }
 0x340   :  { %v1282_v58 = vmin.f32 %v581_v54, 16.0  ;;  %v512_v11 = vadd.f32 1.1283791, %v511_v0  ;;  %v988_v54 = vld [vmem:[%s1353_s1 + $0x8] sm:$0xff]  ;;  %s1090_s1 = smov [#allocation2]  }
 0x341   :  { %1041 = vrcp.f32 %v523_v52  ;;  %v560_v57 = vmul.f32 %v559_v55, %v1266_v32  ;;  %v549_v3 = vmul.f32 %v548_v59, %v1266_v32  ;;  %v533_v14 = vand.u32 2147483647, %v523_v52  ;;  %739 = vmatpush.bf16.xpose.msrb.mxu3 %v988_v54  ;;  %s854_s4 = sshll.u32 %s1090_s1, 4  ;;  %s855_s4 = int_to_ptr.vmem [resolvable:$true] %s854_s4 }
 0x342   :  { %v594_v62 = vmul.f32 3.8918573e-05, %v1282_v58  ;;  %v583_v4 = vmul.f32 2.1237322e-06, %v1282_v58  ;;  %v535_v19 = vand.u32 2147483648, %v523_v52  ;;  %vm529_vm2 = vweird.f32 %v523_v52 }
 0x343   :  { %v1284_v60 = vpop.f32.mrf.mxu2  ;;  %v561_v61 = vadd.f32 0.4994258, %v560_v57  ;;  %v550_v20 = vadd.f32 0.18741608, %v549_v3  ;;  %v513_v33 = vmul.f32 %v512_v11, %v1255_v18  ;;  %vm534_vm4 = vcmp.eq.f32.partialorder %v533_v14, 8.507059e+37 }
 0x344   :  { %v1288_v63 = vmul.f32 0.70710677, %v1284_v60  ;;  %v595_v5 = vadd.f32 0.001143296, %v594_v62  ;;  %v584_v21 = vadd.f32 0.00028619796, %v583_v4 }
 0x345   :  { %v562_v1 = vmul.f32 %v561_v61, %v1266_v32  ;;  %v536_v34 = vor.u32 1.1754944e-38, %v535_v19  ;;  %v551_v35 = vmul.f32 %v550_v20, %v1266_v32  ;;  %v493_v11 = vmul.f32 0.5, %v1252_v17 }
 0x346   :  { %v621_v6 = vmul.f32 %v1288_v63, %v1288_v63  ;;  %v596_v9 = vmul.f32 %v595_v5, %v1282_v58  ;;  %v585_v36 = vmul.f32 %v584_v21, %v1282_v58 }
 0x347   :  { %v1042_v2 = vpop.eup %1041  ;;  %v563_v8 = vadd.f32 1.0, %v562_v1  ;;  %v552_v47 = vadd.f32 1.1283791, %v551_v35 }
 0x348   :  { %v525_v7 = vmul.f32 %v1042_v2, %v523_v52  ;;  %v1296_v10 = vmin.f32 %v621_v6, 16.0  ;;  %vm530_vm1 = vweird.f32 %v1042_v2  ;;  %v597_v24 = vadd.f32 0.014752088, %v596_v9 }
 0x349   :  { %1043 = vrcp.f32 %v563_v8  ;;  %vm531_vm3 = vmor %vm529_vm2, %vm530_vm1  ;;  %v586_v50 = vadd.f32 0.0036580483, %v585_v36  ;;  %v573_v32 = vand.u32 2147483647, %v563_v8  ;;  %v575_v51 = vand.u32 2147483648, %v563_v8 }
 0x34a   :  { %v526_v13 = vsub.f32 1.0, %v525_v7  ;;  %v623_v25 = vmul.f32 2.1237322e-06, %v1296_v10  ;;  %v634_v27 = vmul.f32 3.8918573e-05, %v1296_v10  ;;  %v598_v29 = vmul.f32 %v597_v24, %v1282_v58 }
 0x34b   :  { %vm569_vm6 = vweird.f32 %v563_v8  ;;  %v587_v0 = vmul.f32 %v586_v50, %v1282_v58  ;;  %v553_v1 = vmul.f32 %v552_v47, %v1262_v26  ;;  %vm574_vm8 = vcmp.eq.f32.partialorder %v573_v32, 8.507059e+37 }
 0x34c   :  { %v527_v22 = vmul.f32 %v1042_v2, %v526_v13  ;;  %v624_v30 = vadd.f32 0.00028619796, %v623_v25  ;;  %v635_v31 = vadd.f32 0.001143296, %v634_v27  ;;  %v599_v39 = vadd.f32 0.112945676, %v598_v29 }
 0x34e   :  { %v528_v28 = vadd.f32 %v1042_v2, %v527_v22  ;;  %v636_v40 = vmul.f32 %v635_v31, %v1296_v10  ;;  %v625_v43 = vmul.f32 %v624_v30, %v1296_v10  ;;  %v600_v46 = vmul.f32 %v599_v39, %v1282_v58 }
 0x34f   :  { %v1044_v37 = vpop.eup %1043  ;;  %v494_v22 = vmul.f32 0.5, %v1259_v23 }
 0x350   :  { %v532_v38 = vsel %vm531_vm3, %v1042_v2, %v528_v28  ;;  %v565_v42 = vmul.f32 %v1044_v37, %v563_v8  ;;  %v637_v18 = vadd.f32 0.014752088, %v636_v40  ;;  %v601_v52 = vadd.f32 0.4994258, %v600_v46 }
 0x351   :  { %v537_v41 = vsel %vm534_vm4, %v536_v34, %v532_v38  ;;  %vm570_vm5 = vweird.f32 %v1044_v37  ;;  %v626_v57 = vadd.f32 0.0036580483, %v625_v43  ;;  %v576_v2 = vor.u32 1.1754944e-38, %v575_v51 }
 0x352   :  { %v538_v44 = vmul.f32 %v537_v41, %v513_v33  ;;  %v566_v48 = vsub.f32 1.0, %v565_v42  ;;  %v638_v53 = vmul.f32 %v637_v18, %v1296_v10  ;;  %v602_v59 = vmul.f32 %v601_v52, %v1282_v58  ;;  %vm571_vm7 = vmor %vm569_vm6, %vm570_vm5 }
 0x353   :  { %v627_v7 = vmul.f32 %v626_v57, %v1296_v10  ;;  %v588_v8 = vadd.f32 0.05243302, %v587_v0  ;;  %vm842_vm3 = vcmask 1041409   ;;  %vm845_vm4 = vcmask 123904  }
 0x354   :  { %v973_v55 = vclamps-f32 %v538_v44, 1.0  ;;  %v567_v56 = vmul.f32 %v1044_v37, %v566_v48  ;;  %v639_v61 = vadd.f32 0.112945676, %v638_v53  ;;  %v603_v3 = vadd.f32 1.0, %v602_v59 }
 0x355   :  { %v628_v26 = vadd.f32 0.05243302, %v627_v7  ;;  %v589_v25 = vmul.f32 %v588_v8, %v1282_v58 }
 0x356   :  { %v568_v62 = vadd.f32 %v1044_v37, %v567_v56  ;;  %v640_v4 = vmul.f32 %v639_v61, %v1296_v10  ;;  %v661_v5 = vadd.f32 1.0, %v973_v55  ;;  %1045 = vrcp.f32 %v603_v3 }
 0x357   :  { %v629_v31 = vmul.f32 %v628_v26, %v1296_v10  ;;  %v590_v33 = vadd.f32 0.18741608, %v589_v25  ;;  %v613_v43 = vand.u32 2147483647, %v603_v3  ;;  %v615_v44 = vand.u32 2147483648, %v603_v3 }
 0x358   :  { %v572_v6 = vsel %vm571_vm7, %v1044_v37, %v568_v62  ;;  %v641_v14 = vadd.f32 0.4994258, %v640_v4  ;;  %v665_v19 = vmul.f32 %v661_v5, %v493_v11  ;;  %vm609_vm10 = vweird.f32 %v603_v3 }
 0x359   :  { %v577_v9 = vsel %vm574_vm8, %v576_v2, %v572_v6  ;;  %v630_v37 = vadd.f32 0.18741608, %v629_v31  ;;  %v591_v23 = vmul.f32 %v590_v33, %v1282_v58  ;;  %vm614_vm12 = vcmp.eq.f32.partialorder %v613_v43, 8.507059e+37 }
 0x35a   :  { %v578_v13 = vmul.f32 %v577_v9, %v553_v1  ;;  %v642_v21 = vmul.f32 %v641_v14, %v1296_v10  ;;  %v673_v17 = vpack.c.bf16 %v665_v19, %v665_v19  ;;  %v616_v32 = vor.u32 1.1754944e-38, %v615_v44  ;;  %v1330_v14 = vpop.f32.mrf.mxu3 }
 0x35b   :  { %v631_v46 = vmul.f32 %v630_v37, %v1296_v10  ;;  %v592_v47 = vadd.f32 1.1283791, %v591_v23  ;;  %v496_v5 = vmul.f32 0.5, %v1284_v60  ;;  %v751_v19 = vlaneseq }
 0x35c   :  { %v974_v20 = vclamps-f32 %v578_v13, 1.0  ;;  %v643_v27 = vadd.f32 1.0, %v642_v21  ;;  %v1046_v28 = vpop.eup %1045  ;;  %v693_v38 = vunpack.c.l.b16 %v673_v17 }
 0x35d   :  { %v605_v30 = vmul.f32 %v1046_v28, %v603_v3  ;;  %vm610_vm9 = vweird.f32 %v1046_v28  ;;  %v632_v52 = vadd.f32 1.1283791, %v631_v46  ;;  %v593_v55 = vmul.f32 %v592_v47, %v1275_v49 }
 0x35e   :  { %v662_v24 = vadd.f32 1.0, %v974_v20  ;;  %1047 = vrcp.f32 %v643_v27  ;;  %vm611_vm11 = vmor %vm609_vm10, %vm610_vm9  ;;  %v655_v51 = vand.u32 2147483648, %v643_v27  ;;  %v653_v53 = vand.u32 2147483647, %v643_v27 }
 0x35f   :  { %v606_v34 = vsub.f32 1.0, %v605_v30  ;;  %vm649_vm14 = vweird.f32 %v643_v27  ;;  %v633_v59 = vmul.f32 %v632_v52, %v1288_v63  ;;  %v495_v49 = vmul.f32 0.5, %v1272_v45 }
 0x360   :  { %v666_v29 = vmul.f32 %v662_v24, %v494_v22  ;;  %v656_v10 = vor.u32 1.1754944e-38, %v655_v51  ;;  %vm654_vm1 = vcmp.eq.f32.partialorder %v653_v53, 8.507059e+37  ;;  %v752_v60 = vshrl.u32 %v751_v19, 7 }
 0x361   :  { %v607_v36 = vmul.f32 %v1046_v28, %v606_v34 }
 0x362   :  { %v674_v35 = vpack.c.bf16 %v666_v29, %v666_v29  ;;  %v1332_v20 = vpop.f32.mrf.mxu3  ;;  %vm754_vm2 = vcmp.lt.s32.totalorder %v752_v60, 4 }
 0x363   :  { %v608_v40 = vadd.f32 %v1046_v28, %v607_v36 }
 0x364   :  { %v694_v39 = vunpack.c.l.b16 %v674_v35  ;;  %v1048_v42 = vpop.eup %1047 }
 0x365   :  { %v645_v18 = vmul.f32 %v1048_v42, %v643_v27  ;;  %v612_v48 = vsel %vm611_vm11, %v1046_v28, %v608_v40  ;;  %vm650_vm13 = vweird.f32 %v1048_v42 }
 0x366   :  { %v697_v41 = vpack.c.b16 %v694_v39, %v693_v38  ;;  %v617_v54 = vsel %vm614_vm12, %v616_v32, %v612_v48  ;;  %vm651_vm15 = vmor %vm649_vm14, %vm650_vm13 }
 0x367   :  { %v646_v50 = vsub.f32 1.0, %v645_v18  ;;  %v618_v57 = vmul.f32 %v617_v54, %v593_v55 }
 0x368   :  { %720 = vmatmul.bf16.gmra.mxu3 %v697_v41 }
 0x369   :  { %v647_v58 = vmul.f32 %v1048_v42, %v646_v50  ;;  %v975_v1 = vclamps-f32 %v618_v57, 1.0 }
 0x36b   :  { %v648_v56 = vadd.f32 %v1048_v42, %v647_v58  ;;  %v663_v4 = vadd.f32 1.0, %v975_v1 }
 0x36d   :  { %v652_v61 = vsel %vm651_vm15, %v1048_v42, %v648_v56  ;;  %v667_v7 = vmul.f32 %v663_v4, %v495_v49 }
 0x36e   :  { %v657_v62 = vsel %vm654_vm1, %v656_v10, %v652_v61 }
 0x36f   :  { %v658_v0 = vmul.f32 %v657_v62, %v633_v59  ;;  %v675_v63 = vpack.c.bf16 %v667_v7, %v667_v7 }
 0x371   :  { %v976_v2 = vclamps-f32 %v658_v0, 1.0  ;;  %v695_v13 = vunpack.c.l.b16 %v675_v63 }
 0x373   :  { %v664_v3 = vadd.f32 1.0, %v976_v2 }
 0x375   :  { %v668_v6 = vmul.f32 %v664_v3, %v496_v5 }
 0x377   :  { %v676_v9 = vpack.c.bf16 %v668_v6, %v668_v6 }
 0x378   :  { %740 = vmatmul.bf16.vlgmr.msrb.gmra.mxu3 %v686_v16 }
 0x379   :  { %v696_v11 = vunpack.c.l.b16 %v676_v9 }
 0x37b   :  { %v698_v8 = vpack.c.b16 %v696_v11, %v695_v13 }
 0x388   :  { %745 = vmatmul.bf16.gmra.mxu3 %v698_v8 }
 0x3eb   :  { %v721_v26 = vpop.f32.mrf.mxu3 }
 0x3ec   :  { %v760_v16 = vsel %vm754_vm2, %v721_v26, -1e+30 }
 0x3ed   :  { %v764_v45 = vsel %vm283_vm0, %v760_v16, -inf }
 0x3ee   :  { %v766_v21 = vmax.f32 %v764_v45, %v765_v15 }
 0x3f0   :  { %v767_v22 = vrot.slane %v766_v21, 4 }
 0x3f2   :  { %v768_v24 = vmax.f32 %v766_v21, %v767_v22 }
 0x3f3   :  { %v723_v25 = vpop.f32.mrf.mxu3 }
 0x3f4   :  { %v769_v27 = vrot.slane %v768_v24, 2 }
 0x3f6   :  { %v770_v28 = vmax.f32 %v768_v24, %v769_v27 }
 0x3f8   :  { %v771_v29 = vrot.slane %v770_v28, 1 }
 0x3fa   :  { %v772_v30 = vmax.f32 %v770_v28, %v771_v29 }
 0x3fb   :  { %v741_v31 = vpop.f32.mrf.mxu3 }
 0x3fc   :  { %v782_v17 = vsub.f32 %v760_v16, %v772_v30  ;;  %v783_v33 = vsub.f32 -1e+30, %v772_v30 }
 0x3fe   :  { %v786_v34 = vmul.f32 1.442695, %v782_v17  ;;  %v788_v35 = vmul.f32 1.442695, %v783_v33 }
 0x400   :  { %1049 = vpow2.f32 %v786_v34 }
 0x401   :  { %1051 = vpow2.f32 %v788_v35 }
 0x403   :  { %v743_v36 = vpop.f32.mrf.mxu3 }
 0x406   :  { %v1050_v37 = vpop.eup %1049 }
 0x407   :  { %v1052_v38 = vpop.eup %1051  ;;  %v794_v39 = vsel %vm283_vm0, %v1050_v37, 0.0 }
 0x408   :  { %v795_v23 = vsel %vm283_vm0, %v1052_v38, 0.0 }
 0x409   :  { %v796_v40 = vadd.f32 %v795_v23, %v794_v39 }
 0x40b   :  { %v797_v41 = vrot.slane %v796_v40, 4  ;;  %v746_v42 = vpop.f32.mrf.mxu3 }
 0x40c   :  { %v762_v43 = vsel %vm754_vm2, %v746_v42, -1e+30 }
 0x40d   :  { %v773_v44 = vsel %vm283_vm0, %v762_v43, -inf  ;;  %v798_v18 = vadd.f32 %v797_v41, %v796_v40 }
 0x40e   :  { %v775_v46 = vmax.f32 %v773_v44, %v765_v15 }
 0x40f   :  { %v799_v50 = vrot.slane %v798_v18, 2 }
 0x410   :  { %v776_v47 = vrot.slane %v775_v46, 4 }
 0x411   :  { %v800_v58 = vadd.f32 %v799_v50, %v798_v18 }
 0x412   :  { %v777_v48 = vmax.f32 %v775_v46, %v776_v47 }
 0x413   :  { %v748_v32 = vpop.f32.mrf.mxu3  ;;  %v801_v55 = vrot.slane %v800_v58, 1 }
 0x414   :  { %v778_v51 = vrot.slane %v777_v48, 2 }
 0x415   :  { %v802_v61 = vadd.f32 %v801_v55, %v800_v58 }
 0x416   :  { %v779_v52 = vmax.f32 %v777_v48, %v778_v51 }
 0x418   :  { %v780_v53 = vrot.slane %v779_v52, 1 }
 0x41a   :  { %v781_v54 = vmax.f32 %v779_v52, %v780_v53 }
 0x41c   :  { %v784_v56 = vsub.f32 %v762_v43, %v781_v54  ;;  %v785_v10 = vsub.f32 -1e+30, %v781_v54 }
 0x41e   :  { %v790_v57 = vmul.f32 1.442695, %v784_v56  ;;  %v792_v59 = vmul.f32 1.442695, %v785_v10 }
 0x420   :  { %1053 = vpow2.f32 %v790_v57 }
 0x421   :  { %1055 = vpow2.f32 %v792_v59 }
 0x422   :  { %1057 = vrcp.f32 %v802_v61 }
 0x426   :  { %v1054_v62 = vpop.eup %1053 }
 0x427   :  { %v1056_v0 = vpop.eup %1055  ;;  %v803_v1 = vsel %vm283_vm0, %v1054_v62, 0.0 }
 0x428   :  { %v804_v2 = vsel %vm283_vm0, %v1056_v0, 0.0  ;;  %v1058_v3 = vpop.eup %1057 }
 0x429   :  { %v805_v4 = vadd.f32 %v804_v2, %v803_v1  ;;  %v814_v49 = vmul.f32 %v1058_v3, %v1050_v37  ;;  %v815_v6 = vmul.f32 %v1058_v3, %v1052_v38 }
 0x42b   :  { %v806_v5 = vrot.slane %v805_v4, 4  ;;  %v818_v63 = vmul.f32 %v814_v49, %v1330_v14  ;;  %v819_v11 = vmul.f32 %v815_v6, %v1332_v20 }
 0x42d   :  { %v807_v7 = vadd.f32 %v806_v5, %v805_v4  ;;  %v822_v19 = vsel %vm283_vm0, %v818_v63, 0.0  ;;  %v823_v60 = vsel %vm283_vm0, %v819_v11, 0.0 }
 0x42e   :  { %v824_v12 = vadd.f32 %v823_v60, %v822_v19 }
 0x42f   :  { %v808_v9 = vrot.slane %v807_v7, 2 }
 0x430   :  { %v825_v15 = vrot.slane %v824_v12, 4 }
 0x431   :  { %v809_v13 = vadd.f32 %v808_v9, %v807_v7 }
 0x432   :  { %v826_v22 = vadd.f32 %v825_v15, %v824_v12 }
 0x433   :  { %v810_v8 = vrot.slane %v809_v13, 1 }
 0x434   :  { %v827_v28 = vrot.slane %v826_v22, 2 }
 0x435   :  { %v811_v26 = vadd.f32 %v810_v8, %v809_v13 }
 0x436   :  { %v828_v30 = vadd.f32 %v827_v28, %v826_v22 }
 0x437   :  { %1059 = vrcp.f32 %v811_v26 }
 0x438   :  { %v829_v34 = vrot.slane %v828_v30, 1 }
 0x43d   :  { %v1060_v16 = vpop.eup %1059 }
 0x43e   :  { %v816_v45 = vmul.f32 %v1060_v16, %v1054_v62  ;;  %v817_v21 = vmul.f32 %v1060_v16, %v1056_v0 }
 0x440   :  { %v820_v24 = vmul.f32 %v816_v45, %v741_v31  ;;  %v821_v25 = vmul.f32 %v817_v21, %v743_v36  ;;  %v830_v31 = vadd.f32 %v829_v34, %v828_v30 }
 0x442   :  { %v831_v14 = vsel %vm283_vm0, %v820_v24, 0.0  ;;  %v832_v20 = vsel %vm283_vm0, %v821_v25, 0.0 }
 0x443   :  { %v833_v27 = vadd.f32 %v832_v20, %v831_v14 }
 0x445   :  { %v834_v29 = vrot.slane %v833_v27, 4 }
 0x447   :  { %v835_v17 = vadd.f32 %v834_v29, %v833_v27 }
 0x449   :  { %v836_v33 = vrot.slane %v835_v17, 2 }
 0x44b   :  { %v837_v35 = vadd.f32 %v836_v33, %v835_v17 }
 0x44d   :  { %v838_v37 = vrot.slane %v837_v35, 1 }
 0x44f   :  { %v839_v36 = vadd.f32 %v838_v37, %v837_v35 }
 0x451   :  { %v843_v38 = vsel %vm842_vm3, %v839_v36, %v830_v31 }
 0x452   :  { %846 = vst.msk [vmem:[#allocation2] sm:$0x3] %vm845_vm4, %v843_v38 }
 0x453   :  { %859 = dma.vmem_to_hbm [thread:$0]  %s855_s4, 32, %s857_s20, [#allocation3]  }
 0x454   :  { %1085 = dma.done.wait [#allocation3], 32  }
 0x455   :  { %1086 = vsyncadd [#allocation3], 4294967264 }
 0x456   :  { %866 = vsyncpa [#allocation3], 1 }

</bundles_post_ra>
